<compile_context>
chip_gen: v7x
topology: tpu7x:2x2x1
jax: 0.10.0
libtpu: 0.0.40
codegen_flags: <defaults>
</compile_context>

<pallas_src>
import functools

import jax
import jax.numpy as jnp
from jax.experimental import pallas as pl
from jax.experimental.pallas import tpu as pltpu


# ---------------------------------------------------------------------------
# Fused streaming kernel:  out = x + (nonlin(temb[b]) @ W + bias)[None, :]
# ---------------------------------------------------------------------------
def _noise_merge_kernel(temb_ref, w_ref, b_ref, x_ref, o_ref, *, non_linear):
    # temb_ref: (B, Nc) f32, VMEM-resident.   w_ref: (Nc, Ceff) f32, resident.
    # b_ref: (1, Ceff) f32, resident.          x_ref/o_ref: (1, TR, Ceff) streamed.
    b = pl.program_id(0)
    t = temb_ref[pl.ds(b, 1), :].astype(jnp.float32)          # (1, Nc) this batch row
    if non_linear == "relu":
        t = jnp.maximum(t, 0.0)                               # VPU
    elif non_linear == "silu":
        t = t * jax.nn.sigmoid(t)                             # EUP
    else:
        raise ValueError(f"unsupported non_linear: {non_linear}")

    # Tiny MXU matmul, redundantly recomputed every grid step.  Megacore-safe
    # (no cross-step state) and fully hidden under the HBM-bound DMA stream.
    add = jnp.dot(t, w_ref[...], preferred_element_type=jnp.float32) + b_ref[...]
    add = add.astype(o_ref.dtype)                             # cast the (1, Ceff) addend once

    # Native-dtype broadcast add over the row tile (no full-tile f32 temporary).
    o_ref[...] = x_ref[...] + add[:, None, :]


# ---------------------------------------------------------------------------
# Wrapper: layout selection, tiling, pallas_call
# ---------------------------------------------------------------------------
def noise_merge(input_nd, temb, weight, bias, *,
                non_linear="relu",
                target_block_bytes=4 * 1024 * 1024,
                donate_input=False):
    """NoiseMerge forward (batch_input=True, 3-D input_nd).

    input_nd: (B, L, C);  temb: (B, noise_ch);  weight: (noise_ch, C);
    bias: (C,) or (1, C).

    donate_input=True aliases input_nd's HBM buffer onto the output.  Note: the
    caller's jax.jit must also donate input_nd (donate_argnums), otherwise XLA
    inserts a defensive copy that negates the alias; the alias only saves an
    allocation, not bytes moved — the real traffic lever is bf16 storage.
    """
    B, L, C = input_nd.shape
    Nc = temb.shape[-1]
    itemsize = jnp.dtype(input_nd.dtype).itemsize
    bias2 = jnp.asarray(bias, dtype=jnp.float32).reshape(1, C)
    temb_f32 = temb.astype(jnp.float32)
    weight_f32 = weight.astype(jnp.float32)

    # --- pick a lane-dense layout for the streamed tensor ---------------------
    if C % 128 == 0:
        reps, Ceff, R = 1, C, L                   # already lane-dense
        x2 = input_nd
    elif C < 128 and 128 % C == 0 and (L * C) % 128 == 0:
        reps = 128 // C
        Ceff = 128
        R = (L * C) // 128                        # rows of 128 lanes per batch
        x2 = input_nd.reshape(B, R, Ceff)         # free row-major reshape
    else:
        # Correct but lands on masked partial stores (see TODO at top).
        reps, Ceff, R = 1, C, L
        x2 = input_nd

    # Pre-tile W / bias so the in-kernel linear directly produces the lane-dense
    # addend: tile(W, reps)[:, j] == W[:, j mod C]  (addend is constant along L).
    w_eff = weight_f32 if reps == 1 else jnp.tile(weight_f32, (1, reps))   # (Nc, Ceff)
    b_eff = bias2 if reps == 1 else jnp.tile(bias2, (1, reps))             # (1, Ceff)

    # --- row tile: ~target_block_bytes per streamed block, sublane-aligned ----
    rows_target = max(1, target_block_bytes // max(1, Ceff * itemsize))
    if rows_target >= R:
        TR = R
    else:
        TR = min(max(8, (rows_target // 8) * 8), R)
    num_tiles = pl.cdiv(R, TR)
    grid = (B, num_tiles)

    # VMEM budget: 2 double-buffered streams (x + out) of one block each, plus
    # the tiny resident temb/W/bias and compiler slack.  Right-sized so the rest
    # of scoped VMEM stays available to surrounding fusions (matters on v7x).
    block_bytes = TR * Ceff * itemsize
    vmem_limit = int(min(max(4 * block_bytes + (8 << 20), 24 << 20), 96 << 20))

    out2 = pl.pallas_call(
        functools.partial(_noise_merge_kernel, non_linear=non_linear),
        out_shape=jax.ShapeDtypeStruct((B, R, Ceff), input_nd.dtype),
        grid=grid,
        in_specs=[
            pl.BlockSpec((B, Nc), lambda b, i: (0, 0)),            # temb, resident
            pl.BlockSpec((Nc, Ceff), lambda b, i: (0, 0)),         # W, resident
            pl.BlockSpec((1, Ceff), lambda b, i: (0, 0)),          # bias, resident
            pl.BlockSpec((1, TR, Ceff), lambda b, i: (b, i, 0)),   # streamed x tiles
        ],
        out_specs=pl.BlockSpec((1, TR, Ceff), lambda b, i: (b, i, 0)),
        compiler_params=pltpu.CompilerParams(
            # Both axes independent: shard tiles across v7x's two TensorCores
            # (measured no-op on single-TC v5e/v6e, so safe everywhere).
            dimension_semantics=("parallel", "parallel"),
            vmem_limit_bytes=vmem_limit,
        ),
        cost_estimate=pl.CostEstimate(
            flops=B * R * Ceff + B * num_tiles * 2 * Nc * Ceff,
            transcendentals=0,
            bytes_accessed=(2 * B * R * Ceff * itemsize
                            + 4 * (B * Nc + Nc * Ceff + Ceff)),
        ),
        # x2 is input index 3; alias its HBM buffer onto the output if donated.
        input_output_aliases=({3: 0} if donate_input else {}),
    )(temb_f32, w_eff, b_eff, x2)

    return out2.reshape(B, L, C)


if __name__ == "__main__":
    # Small deterministic shapes consistent with the module's forward
    B, L = 2, 8          # batch, sequence length
    noise_ch = 32        # temb channel dim
    act_noise_ch = 32    # input_nd channel dim (output of temb_layer)

    key = jax.random.PRNGKey(0)
    k_x, k_t, k_w = jax.random.split(key, 3)

    input_nd = jax.random.normal(k_x, (B, L, act_noise_ch), dtype=jnp.float32)
    temb = jax.random.normal(k_t, (B, noise_ch), dtype=jnp.float32)

    # Deterministic 'relu'-style init for Linear(noise_ch, act_noise_ch)
    scale = (2.0 / noise_ch) ** 0.5
    weight = scale * jax.random.normal(k_w, (noise_ch, act_noise_ch), dtype=jnp.float32)
    bias = jnp.zeros((1, act_noise_ch), dtype=jnp.float32)

    out = noise_merge(input_nd, temb, weight, bias)
    out = jax.block_until_ready(out)

    # Reference in plain JAX (mirrors the PyTorch forward with batch_input=True)
    temb_lin = jnp.maximum(temb, 0.0) @ weight + bias
    ref = input_nd + temb_lin[:, None, :]
    assert out.shape == ref.shape
    assert jnp.allclose(out, ref, atol=1e-5, rtol=1e-5), "f32 mismatch vs reference"

    # bf16 storage path (halves HBM bytes moved; add is done natively in bf16)
    x_bf16 = input_nd.astype(jnp.bfloat16)
    out_bf16 = jax.block_until_ready(noise_merge(x_bf16, temb, weight, bias))
    ref_bf16 = (x_bf16.astype(jnp.float32) + temb_lin[:, None, :]).astype(jnp.bfloat16)
    assert jnp.allclose(out_bf16.astype(jnp.float32), ref_bf16.astype(jnp.float32),
                        atol=5e-2, rtol=5e-2), "bf16 mismatch vs reference"

    # silu branch smoke test
    out_silu = jax.block_until_ready(
        noise_merge(input_nd, temb, weight, bias, non_linear="silu"))
    ref_silu = input_nd + ((temb * jax.nn.sigmoid(temb)) @ weight + bias)[:, None, :]
    assert jnp.allclose(out_silu, ref_silu, atol=1e-4, rtol=1e-4), "silu mismatch"

    print("KERNEL_OK")
</pallas_src>

<mosaic_0001>
module attributes {stable_mosaic.version = 11 : i64} {
  func.func @_noise_merge_kernel(%arg0: i32, %arg1: i32, %arg2: memref<2x32xf32, #tpu.memory_space<vmem>>, %arg3: memref<32x128xf32, #tpu.memory_space<vmem>>, %arg4: memref<1x128xf32, #tpu.memory_space<vmem>>, %arg5: memref<1x2x128xf32, #tpu.memory_space<vmem>>, %arg6: memref<1x2x128xf32, #tpu.memory_space<vmem>>) attributes {dimension_semantics = [#tpu.dimension_semantics<parallel>, #tpu.dimension_semantics<parallel>], iteration_bounds = array<i64: 2, 1>, scalar_prefetch = 0 : i64, scratch_operands = 0 : i64, tpu.core_type = #tpu.core_type<tc>, window_params = [{pipeline_mode = #tpu.pipeline_mode<synchronous>, transform_indices = @transform_0, window_bounds = array<i64: 2, 32>}, {pipeline_mode = #tpu.pipeline_mode<synchronous>, transform_indices = @transform_1, window_bounds = array<i64: 32, 128>}, {pipeline_mode = #tpu.pipeline_mode<synchronous>, transform_indices = @transform_2, window_bounds = array<i64: 1, 128>}, {transform_indices = @transform_3, window_bounds = array<i64: 1, 2, 128>}, {transform_indices = @transform_4, window_bounds = array<i64: 1, 2, 128>}]} {
    %0 = arith.index_cast %arg0 : i32 to index
    %c0 = arith.constant 0 : index
    %1 = vector.load %arg2[%0, %c0] : memref<2x32xf32, #tpu.memory_space<vmem>>, vector<1x32xf32>
    %cst = arith.constant 0.000000e+00 : f32
    %2 = vector.broadcast %cst : f32 to vector<1x32xf32>
    %3 = arith.maximumf %1, %2 : vector<1x32xf32>
    %c0_0 = arith.constant 0 : index
    %c0_1 = arith.constant 0 : index
    %4 = vector.load %arg3[%c0_0, %c0_1] : memref<32x128xf32, #tpu.memory_space<vmem>>, vector<32x128xf32>
    %cst_2 = arith.constant dense<0.000000e+00> : vector<1x128xf32>
    %5 = tpu.matmul %3, %4, %cst_2 {dimension_numbers = #tpu.dot_dimension_numbers<[1], [0], [0], [1], [0, 0, 1, 1], [], []>} : vector<1x32xf32>, vector<32x128xf32>, vector<1x128xf32> -> vector<1x128xf32>
    %c0_3 = arith.constant 0 : index
    %c0_4 = arith.constant 0 : index
    %6 = vector.load %arg4[%c0_3, %c0_4] : memref<1x128xf32, #tpu.memory_space<vmem>>, vector<1x128xf32>
    %7 = arith.addf %5, %6 : vector<1x128xf32>
    %c0_5 = arith.constant 0 : index
    %c0_6 = arith.constant 0 : index
    %c0_7 = arith.constant 0 : index
    %8 = vector.load %arg5[%c0_5, %c0_6, %c0_7] : memref<1x2x128xf32, #tpu.memory_space<vmem>>, vector<1x2x128xf32>
    %9 = vector.shape_cast %7 : vector<1x128xf32> to vector<1x1x128xf32>
    %10 = vector.broadcast %9 : vector<1x1x128xf32> to vector<1x2x128xf32>
    %11 = arith.addf %8, %10 : vector<1x2x128xf32>
    %c0_8 = arith.constant 0 : index
    %c0_9 = arith.constant 0 : index
    %c0_10 = arith.constant 0 : index
    %12 = vector.load %arg6[%c0_8, %c0_9, %c0_10] : memref<1x2x128xf32, #tpu.memory_space<vmem>>, vector<1x2x128xf32>
    tpu.vector_store %arg6[%c0_8, %c0_9, %c0_10], %11 {strides = array<i32>} : memref<1x2x128xf32, #tpu.memory_space<vmem>>, vector<1x2x128xf32>,
    return
  }
  func.func @transform_0(%arg0: i32, %arg1: i32) -> (i32, i32) {
    %c0_i32 = arith.constant 0 : i32
    %c0_i32_0 = arith.constant 0 : i32
    %c0_i32_1 = arith.constant 0 : i32
    return %c0_i32, %c0_i32_0 : i32, i32
  }
  func.func @transform_1(%arg0: i32, %arg1: i32) -> (i32, i32) {
    %c0_i32 = arith.constant 0 : i32
    %c0_i32_0 = arith.constant 0 : i32
    %c0_i32_1 = arith.constant 0 : i32
    return %c0_i32, %c0_i32_0 : i32, i32
  }
  func.func @transform_2(%arg0: i32, %arg1: i32) -> (i32, i32) {
    %c0_i32 = arith.constant 0 : i32
    %c0_i32_0 = arith.constant 0 : i32
    %c0_i32_1 = arith.constant 0 : i32
    return %c0_i32, %c0_i32_0 : i32, i32
  }
  func.func @transform_3(%arg0: i32, %arg1: i32) -> (i32, i32, i32) {
    %c0_i32 = arith.constant 0 : i32
    %c0_i32_0 = arith.constant 0 : i32
    return %arg0, %arg1, %c0_i32 : i32, i32, i32
  }
  func.func @transform_4(%arg0: i32, %arg1: i32) -> (i32, i32, i32) {
    %c0_i32 = arith.constant 0 : i32
    %c0_i32_0 = arith.constant 0 : i32
    return %arg0, %arg1, %c0_i32 : i32, i32, i32
  }
}

</mosaic_0001>

<bundles_post_ra>
// kernel: tpu_custom_call.1
= control target key start
LH: loop header
LB: loop body
LE: loop exit
PB: predicated region body
PF: predicated region fallthrough
CT: control target
= control target key end

     0   :  { %9 = vsyncpa [#allocation3], 0  ;;  %s931_s0 = inlined_call_operand.hbm [shape: f32[2,32], index: 0, kind: input, shape index: {}]   ;;  %s932_s1 = inlined_call_operand.hbm [shape: f32[32,128], index: 1, kind: input, shape index: {}]   ;;  %s933_s2 = inlined_call_operand.vmem [shape: f32[1,128], index: 2, kind: input, shape index: {}]   ;;  %s934_s3 = inlined_call_operand.vmem [shape: f32[2,2,128], index: 3, kind: input, shape index: {}]   ;;  %s935_s4 = inlined_call_operand.hbm [shape: f32[2,2,128], index: 4, kind: output, shape index: {}]  }
   0x1   :  { %10 = vsyncpa [#allocation6], 0 }
   0x2   :  { %11 = vsyncpa [#allocation4], 0 }
   0x3   :  { %13 = vsyncpa [#allocation4 + $0x1], 0  ;;  %s740_s15 = smov 0   ;;  %s742_s16 = smov 0  }
   0x4   :  { %s744_s17 = smov 0   ;;  %s746_s18 = smov 0  }
   0x5   :  { %s748_s19 = smov 0   ;;  %s750_s20 = smov 0  }
   0x6 LB: > { %s444_s21 = sadd.s32 4294967295, %s705_s20   ;;  %s445_s22 = sadd.s32 4294967294, %s705_s20   ;;  %s705_s20 = sphi %s750_s20, %s19_s20   ;;  %s701_s19 = sphi %s748_s19, %s953_s19   ;;  %s697_s18 = sphi %s746_s18, %s952_s18   ;;  %s693_s17 = sphi %s744_s17, %s951_s17   ;;  %s689_s16 = sphi %s742_s16, %s950_s16   ;;  %s685_s15 = sphi %s740_s15, %s949_s15  }
   0x7   : > { %s31_s23 = sadd.s32 1, %s701_s19  ;;  %s131_s24 = sadd.s32 1, %s693_s17 }
   0x8   : > { %p33_p0 = scmp.ge.s32.totalorder %s31_s23, 2  ;;  %p141_p1 = scmp.ne.s32.totalorder %s693_s17, %s689_s16 }
   0x9   : > { %p142_p2 = scmp.eq.s32.totalorder %s444_s21, 1  ;;  %p147_p3 = scmp.ne.s32.totalorder %s689_s16, %s685_s15 }
   0xa   : > { %s955_s23 = smov (%p33_p0, %s31_s23), 0  ;;  %p148_p5 = scmp.eq.s32.totalorder %s445_s22, 1 }
   0xb   : > { %p780_p4 = por %p142_p2, %p141_p1  ;;  %s126_s26 = ssub.s32 %s701_s19, %s955_s23 }
   0xc   : > { %p446_p6 = scmp.ge.s32.totalorder %s705_s20, 1  ;;  %p129_p7 = scmp.eq.s32.totalorder %s126_s26, 0 }
   0xd   : > { %s940_s25 = scalar_select %p780_p4, 1, 0 }
   0xe   : > { %p787_p8 = por %p148_p5, %p147_p3  ;;  %p155_p9 = scmp.lt.s32.totalorder %s705_s20, 3 }
   0xf   : > { %s793_s28 = scalar_select %p129_p7, %s693_s17, %s131_s24  }
  0x10   : > { %s941_s27 = scalar_select %p787_p8, 1, 0 }
  0x11   : > { %p795_p10 = pnand %p446_p6, %p155_p9  ;;  %p799_p11 = scmp.eq.s32.totalorder %s444_s21, 0 }
  0x12   : > { %s707_s5 = smov [#allocation2]   ;;  %s708_s7 = smov [#allocation5]  }
  0x13   : > { %s942_s29 = scalar_select %p795_p10, 1, 0 }
  0x14   : > { %s943_s30 = scalar_select %p799_p11, 1, 0 }
  0x15   : > { %p492_p12 = pneg %p795_p10  ;;  %s168_s6 = sshll.u32 %s707_s5, 4  ;;  %s169_s6 = int_to_ptr.vmem [resolvable:$true] %s168_s6 }
  0x16   : > { %s178_s8 = sshll.u32 %s708_s7, 4  ;;  %s563_s12 = scalar_lea.hbm %s931_s0, 32  ;;  %s811_s8 = int_to_ptr.vmem [resolvable:$true] %s178_s8 }
  0x17   : > { %p807_p13 = pnand %p799_p11, %p492_p12  ;;  %p564_p0 = scmp.ne.s32.totalorder %s931_s0, %s563_s12 }
  0x18   : > { %p570_p5 = scmp.lt.u32.totalorder %s563_s12, %s931_s0 }
  0x19   : > { %p565_p1 = pneg %p807_p13 }
  0x1b   : > { %p566_p2 = pnand %p565_p1, %p564_p0 }
  0x1d   : > { %p567_p3 = pneg %p566_p2 }
  0x1f   : > { %p572_p6 = pnand %p570_p5, %p567_p3 }
  0x21   : > { %575 = shalt.err (!%p572_p6)
}
  0x22   : > { %s576_s24 = scalar_lea.vmem %s169_s6, 32  ;;  %p584_p8 = scmp.lt.s32.totalorder %s169_s6, %s169_s6 }
  0x23   : > { %p577_p7 = scmp.ne.s32.totalorder %s169_s6, %s576_s24  ;;  %p585_p4 = scmp.lt.s32.totalorder %s576_s24, %s576_s24 }
  0x25   : > { %p579_p9 = pnand %p577_p7, %p565_p1  ;;  %p586_p11 = por %p585_p4, %p584_p8 }
  0x27   : > { %p580_p12 = pneg %p579_p9 }
  0x29   : > { %p587_p10 = pnand %p586_p11, %p580_p12 }
  0x2b   : > { %590 = shalt.err (!%p587_p10)
}
  0x2c   : > { %495 = dma.hbm_to_vmem [thread:$0]  (!%p807_p13), %s931_s0, 32, %s169_s6, [#allocation3]  }
  0x2d   : > { %s591_s11 = scalar_lea.hbm %s932_s1, 512 }
  0x2e   : > { %p592_p0 = scmp.ne.s32.totalorder %s932_s1, %s591_s11  ;;  %p598_p10 = scmp.lt.u32.totalorder %s591_s11, %s932_s1 }
  0x30   : > { %p594_p4 = pnand %p592_p0, %p565_p1 }
  0x32   : > { %p595_p8 = pneg %p594_p4 }
  0x34   : > { %p600_p11 = pnand %p598_p10, %p595_p8 }
  0x36   : > { %603 = shalt.err (!%p600_p11)
}
  0x37   : > { %s604_s6 = scalar_lea.vmem %s811_s8, 512  ;;  %p612_p6 = scmp.lt.s32.totalorder %s811_s8, %s811_s8 }
  0x38   : > { %p605_p2 = scmp.ne.s32.totalorder %s811_s8, %s604_s6  ;;  %p613_p7 = scmp.lt.s32.totalorder %s604_s6, %s604_s6 }
  0x3a   : > { %p607_p3 = pnand %p605_p2, %p565_p1  ;;  %p614_p9 = por %p613_p7, %p612_p6 }
  0x3c   : > { %p608_p5 = pneg %p607_p3 }
  0x3e   : > { %p615_p12 = pnand %p614_p9, %p608_p5 }
  0x40   : > { %618 = shalt.err (!%p615_p12)
}
  0x41   : > { %s709_s22 = smov 128   ;;  %s710_s24 = smov 8  }
  0x42   : > { %498 = dma.hbm_to_vmem [thread:$0]  (!%p807_p13), %s932_s1, 512, %s811_s8, [#allocation6], %s709_s22, %s709_s22, %s710_s24  }
  0x43   : > { %p945_p0 = scmp.ne.s32.totalorder %s942_s29, 0 }
  0x44   : > { %p946_p1 = scmp.ne.s32.totalorder (!%p945_p0), %s943_s30, 0 }
  0x45   : > { %207 = sbr.rel (%p945_p0) target bundleno = 322 (0x142), region = 36 }
  0x4c   : > { %672 = dma.done.wait (%p946_p1), [#allocation3], 32  }
  0x4d   : > { %674 = vsyncadd (%p946_p1), [#allocation3], 4294967264 }
  0x4e   : > { %676 = dma.done.wait (%p946_p1), [#allocation6], 512  }
  0x4f   : > { %678 = vsyncadd (%p946_p1), [#allocation6], 4294966784  ;;  %v711_v0 = vmov 0.0|0.0   ;;  %vm712_vm0 = vmmov 0   ;;  %v713_v1 = vmov 0.0   ;;  %v249_v2 = vld [vmem:[#allocation5] sm:$0xff]  ;;  %v329_v10 = vlaneseq }
  0x50   : > { %476 = vmatprep.subr.bf16.mxu0 %v711_v0  ;;  %473 = vmatprep.mubr.msk.f32.mxu0 %vm712_vm0, %v713_v1  ;;  %v250_v3 = vld [vmem:[#allocation5 + $0x8] sm:$0xff]  ;;  %v251_v4 = vld [vmem:[#allocation5 + $0x10] sm:$0xff]  ;;  %v252_v6 = vld [vmem:[#allocation5 + $0x18] sm:$0xff]  ;;  %s246_s29 = scalar_lea.vmem [#allocation2], %s697_s18  ;;  %vm254_vm1 = vcmask 261120   ;;  %p239_p13 = scmp.lt.s32.totalorder %s697_s18, 1 }
  0x51   : > { %v477_v5 = vpack.c.bf16 %v250_v3, %v249_v2  ;;  %v480_v7 = vpack.c.bf16 %v252_v6, %v251_v4  ;;  %v247_v8 = vld [vmem:[%s246_s29] sm:$0x1]  ;;  %s236_s8 = sand.u32 1, %s689_s16   ;;  %v330_v11 = vshrl.u32 %v329_v10, 7  ;;  %s457_s21 = sshll.u32 %s697_s18, 5 }
  0x52   : > { %v248_v9 = vmax.f32 %v247_v8, 0.0  ;;  %s240_s30 = scalar_select %p239_p13, %s697_s18, 1  ;;  %v253_v12 = vld [vmem:[%s933_s2] sm:$0x1] }
  0x53   : > { %478 = vmatpush3.bf16.msra.mxu0 %v477_v5  ;;  %s453_s7 = sshll.u32 %s236_s8, 1  ;;  %v331_v13 = vsub.s32 0, %v330_v11  ;;  %s884_s5 = scalar_lea.hbm %s935_s4, %s457_s21 }
  0x54   : > { %479 = vmatprep.subr.bf16.mxu0 %v711_v0  ;;  %s454_s9 = sshll.u32 %s240_s30, 1  ;;  %s238_s6 = scalar_lea.vmem [#allocation7], %s453_s7 }
  0x55   : > { %s245_s14 = scalar_lea.vmem %s934_s3, %s454_s9  ;;  %s350_s22 = sshll.u32 %s238_s6, 4  ;;  %s886_s22 = int_to_ptr.vmem [resolvable:$true] %s350_s22 }
  0x56   : > { %v328_v17 = vld [vmem:[%s245_s14] sm:$0x3]  ;;  %s336_s29 = scalar_lea.sflag [#allocation4], %s236_s8  ;;  %s619_s30 = scalar_lea.vmem %s886_s22, 32 }
  0x57   : > { %481 = vmatpush3.bf16.msra.mxu0 %v480_v7  ;;  %p620_p4 = scmp.ne.s32.totalorder %s886_s22, %s619_s30  ;;  %p947_p8 = scmp.ne.s32.totalorder %s940_s25, 0 }
  0x58   : > { %s714_s18 = smov [#allocation7]  }
  0x59   : > { %p621_p10 = pnand %p620_p4, %p947_p8  ;;  %s623_s9 = sshll.u32 %s714_s18, 4  ;;  %s624_s9 = int_to_ptr.vmem [resolvable:$false] %s623_s9 }
  0x5a   : > { %474 = vmatmul.mubr.msk.f32.vlgmr.msra.gmra.mrb[0].mxu0 %vm254_vm1, %v248_v9  ;;  %s625_s7 = scalar_lea.vmem %s624_s9, 64  ;;  %p626_p2 = scmp.lt.s32.totalorder %s886_s22, %s624_s9 }
  0x5b   : > { %p622_p11 = pneg %p621_p10  ;;  %p627_p3 = scmp.lt.s32.totalorder %s625_s7, %s619_s30 }
  0x5d   : > { %p628_p5 = por %p627_p3, %p626_p2 }
  0x5f   : > { %p629_p6 = pnand %p628_p5, %p622_p11 }
 0x12d   : > { %v324_v14 = vpop.f32.mrb[0].mxu0 }
 0x12e   : > { %v325_v15 = vadd.f32 %v324_v14, %v253_v12  ;;  %v475_v16 = vpop.f32.mrb[1].mxu0 }
 0x130   : > { %v332_v18 = vrot.slane %v325_v15, %v331_v13 }
 0x132   : > { %v333_v19 = vadd.f32 %v332_v18, %v328_v17 }
 0x134   : > { %334 = vst [vmem:[%s238_s6] sm:$0x3] %v333_v19 }
 0x135   : > { %632 = shalt.err (!%p629_p6)
}
 0x136   : > { %s633_s8 = scalar_lea.hbm %s884_s5, 32  ;;  %s637_s12 = scalar_lea.hbm %s935_s4, 64 }
 0x137   : > { %p634_p7 = scmp.ne.s32.totalorder %s884_s5, %s633_s8  ;;  %p638_p0 = scmp.lt.u32.totalorder %s884_s5, %s935_s4 }
 0x138   : > { %p639_p1 = scmp.lt.u32.totalorder %s637_s12, %s633_s8  ;;  %p641_p4 = scmp.lt.u32.totalorder %s633_s8, %s884_s5 }
 0x139   : > { %p635_p9 = pnand %p634_p7, %p947_p8 }
 0x13a   : > { %p640_p13 = por %p639_p1, %p638_p0 }
 0x13b   : > { %p636_p12 = pneg %p635_p9 }
 0x13c   : > { %p642_p10 = por %p641_p4, %p640_p13 }
 0x13e   : > { %p643_p11 = pnand %p642_p10, %p636_p12 }
 0x140   : > { %646 = shalt.err (!%p643_p11)
}
 0x141   : > { %490 = dma.vmem_to_hbm [thread:$0]  (%p947_p8), %s886_s22, 32, %s884_s5, %s336_s29  }
 0x142 PF: > { %p507_p2 = scmp.ge.s32.totalorder %s705_s20, 2  ;;  %s362_s21 = sand.u32 1, %s685_s15  }
 0x143   : > { %p948_p3 = scmp.ne.s32.totalorder %s941_s27, 0  ;;  %s363_s6 = scalar_lea.sflag [#allocation4], %s362_s21 }
 0x145   : > { %p500_p5 = pnand %p507_p2, %p948_p3 }
 0x147   : > { %680 = dma.done.wait (!%p500_p5), %s363_s6, 32  }
 0x148   : > { %682 = vsyncadd (!%p500_p5), %s363_s6, 4294967264  ;;  %s19_s20 = sadd.s32 1, %s705_s20   ;;  %s949_s15 = smov %s689_s16 }
 0x149   : > { %p16_p6 = scmp.ge.s32.totalorder %s19_s20, 4   ;;  %s950_s16 = smov %s693_s17 }
 0x14a   : > { %s951_s17 = smov %s793_s28  ;;  %s952_s18 = smov %s701_s19 }
 0x14b   : > { %s953_s19 = smov %s955_s23  ;;  %18 = sbr.rel (!%p16_p6) target bundleno = 6 (0x6), region = 81 }
 0x152   :  { %368 = vsyncpa [#allocation3], 1 }
 0x153   :  { %370 = vsyncpa [#allocation3 + $0x1], 1 }
 0x154   :  { %371 = vsyncpa [#allocation6], 1 }
 0x155   :  { %372 = vsyncpa [#allocation4], 1 }
 0x156   :  { %374 = vsyncpa [#allocation4 + $0x1], 1 }

</bundles_post_ra>
